<compile_context>
chip_gen: v7x
topology: tpu7x:2x2x1
jax: 0.10.0
libtpu: 0.0.40
codegen_flags: <defaults>
</compile_context>

<pallas_src>
import jax
import jax.numpy as jnp
from jax.experimental import pallas as pl
from jax.experimental.pallas import tpu as pltpu


def se_kernel(x_ref, w1t_ref, w2t_ref, o_ref):
    # x_ref: (block_b, C, L) in the input dtype; w1t: (C, C//r); w2t: (C//r, C)
    x = x_ref[...]
    xf = x.astype(jnp.float32)                      # compute in f32 (mandatory on v5e)
    L = x.shape[-1]

    # Two-pass unbiased variance over L (numerically robust; the slab is
    # VMEM-resident so the second pass costs no extra HBM traffic).
    mean = jnp.sum(xf, axis=-1, keepdims=True) * jnp.float32(1.0 / L)
    if L > 1:                                       # static Python branch
        d = xf - mean
        var = jnp.sum(d * d, axis=-1) * jnp.float32(1.0 / (L - 1))   # (block_b, C)
    else:
        # torch.var(dim=-1, unbiased=True) over a size-1 dim yields NaN.
        var = jnp.full(x.shape[:-1], jnp.nan, dtype=jnp.float32)

    # Linear(C, C//r, bias=False) -> ReLU -> Linear(C//r, C, bias=False) -> Sigmoid
    h = jnp.maximum(
        jnp.dot(var, w1t_ref[...], preferred_element_type=jnp.float32), 0.0)
    g = jax.nn.sigmoid(
        jnp.dot(h, w2t_ref[...], preferred_element_type=jnp.float32))   # (block_b, C)

    # Channel-wise rescale in f32; cast only at the store.
    o_ref[...] = (xf * g[:, :, None]).astype(o_ref.dtype)


def _vmem_limit_bytes():
    """Generation-aware scoped-VMEM request, leaving compiler scratch headroom."""
    cap = 64 << 20                                   # conservative default (v7x per-TC)
    try:
        info = pltpu.get_tpu_info()
        cap = int(getattr(info, "vmem_capacity_bytes", cap) or cap)
    except Exception:
        pass
    # ~12 MiB headroom for compiler/internal scratch; never request > 100 MiB.
    return max(min(cap - (12 << 20), 100 << 20), 32 << 20)


def _pick_block_b(B, C, L, itemsize, block_budget_bytes):
    """Largest divisor of B whose block fits the budget, keeping >= min(B, 4)
    grid steps so both v7x TensorCores stay busy."""
    # 2x double-buffered input + 2x double-buffered output (input dtype) plus
    # ~2 full-block f32 temporaries (xf / centered square) per element.
    per_elem = 4 * itemsize + 8
    row_bytes = max(C * L * per_elem, 1)
    max_rows = max(int(block_budget_bytes // row_bytes), 1)
    max_rows = min(max_rows, max(B // 4, 1))         # grid >= min(B, 4) steps
    block_b = 1
    for d in range(1, max_rows + 1):
        if B % d == 0:
            block_b = d
    return block_b


def squeeze_and_excitation(x, w1, w2, *, block_b=None):
    """x: (B, C, L). w1: (C//r, C), w2: (C, C//r) — PyTorch Linear weight layout."""
    B, C, L = x.shape
    hidden = w1.shape[0]

    # Pre-transpose weights so the kernel does plain row-major matmuls.
    w1t = jnp.asarray(w1).T                          # (C, C//r)
    w2t = jnp.asarray(w2).T                          # (C//r, C)

    itemsize = jnp.dtype(x.dtype).itemsize
    w_bytes = int((w1t.size + w2t.size) * jnp.dtype(w1t.dtype).itemsize)

    vmem_limit = _vmem_limit_bytes()
    if block_b is None:
        block_budget = max(vmem_limit - w_bytes - (4 << 20), 4 << 20)
        block_b = _pick_block_b(B, C, L, itemsize, block_budget)
    assert B % block_b == 0, "block_b must divide B"

    cost = pl.CostEstimate(
        flops=int(2 * 2 * B * C * hidden             # two tiny gate matmuls
                  + 5 * B * C * L),                  # two-pass variance + rescale
        transcendentals=int(B * C),                  # sigmoid
        bytes_accessed=int(2 * B * C * L * itemsize + w_bytes),
    )

    grid = (B // block_b,)
    return pl.pallas_call(
        se_kernel,
        out_shape=jax.ShapeDtypeStruct((B, C, L), x.dtype),
        grid=grid,
        in_specs=[
            pl.BlockSpec((block_b, C, L), lambda b: (b, 0, 0)),
            pl.BlockSpec((C, hidden), lambda b: (0, 0)),
            pl.BlockSpec((hidden, C), lambda b: (0, 0)),
        ],
        out_specs=pl.BlockSpec((block_b, C, L), lambda b: (b, 0, 0)),
        compiler_params=pltpu.CompilerParams(
            dimension_semantics=("parallel",),       # rows independent -> megacore
            vmem_limit_bytes=int(vmem_limit),
        ),
        cost_estimate=cost,
    )(x, w1t, w2t)


def _reference(x, w1, w2):
    # plain-JAX reference mirroring the PyTorch module
    var = jnp.var(x, axis=-1, ddof=1)                # (B, C), unbiased
    h = jnp.maximum(var @ w1.T, 0.0)                 # Linear + ReLU
    g = jax.nn.sigmoid(h @ w2.T)                     # Linear + Sigmoid
    return x * g[:, :, None]


if __name__ == "__main__":
    B, C, L, ratio = 2, 4, 16, 2
    hidden = C // ratio

    key = jax.random.PRNGKey(0)
    kx, k1, k2 = jax.random.split(key, 3)

    x = jax.random.normal(kx, (B, C, L), dtype=jnp.float32)
    # deterministic synthetic weights, PyTorch Linear shapes (out, in)
    w1 = jax.random.normal(k1, (hidden, C), dtype=jnp.float32) * 0.5
    w2 = jax.random.normal(k2, (C, hidden), dtype=jnp.float32) * 0.5

    out = jax.block_until_ready(squeeze_and_excitation(x, w1, w2))

    ref = _reference(x, w1, w2)
    assert out.shape == (B, C, L)
    assert jnp.allclose(out, ref, atol=1e-5, rtol=1e-5), "mismatch vs reference"

    print("KERNEL_OK")
</pallas_src>

<mosaic_0001>
module attributes {stable_mosaic.version = 11 : i64} {
  func.func @se_kernel(%arg0: i32, %arg1: memref<1x4x16xf32, #tpu.memory_space<vmem>>, %arg2: memref<4x2xf32, #tpu.memory_space<vmem>>, %arg3: memref<2x4xf32, #tpu.memory_space<vmem>>, %arg4: memref<1x4x16xf32, #tpu.memory_space<vmem>>) attributes {dimension_semantics = [#tpu.dimension_semantics<parallel>], iteration_bounds = array<i64: 2>, scalar_prefetch = 0 : i64, scratch_operands = 0 : i64, tpu.core_type = #tpu.core_type<tc>, window_params = [{transform_indices = @transform_0, window_bounds = array<i64: 1, 4, 16>}, {pipeline_mode = #tpu.pipeline_mode<synchronous>, transform_indices = @transform_1, window_bounds = array<i64: 4, 2>}, {pipeline_mode = #tpu.pipeline_mode<synchronous>, transform_indices = @transform_2, window_bounds = array<i64: 2, 4>}, {transform_indices = @transform_3, window_bounds = array<i64: 1, 4, 16>}]} {
    %c0 = arith.constant 0 : index
    %c0_0 = arith.constant 0 : index
    %c0_1 = arith.constant 0 : index
    %0 = vector.load %arg1[%c0, %c0_0, %c0_1] : memref<1x4x16xf32, #tpu.memory_space<vmem>>, vector<1x4x16xf32>
    %cst = arith.constant dense<0.000000e+00> : vector<1x4xf32>
    %1 = vector.multi_reduction <add>, %0, %cst [2] : vector<1x4x16xf32> to vector<1x4xf32>
    %2 = vector.shape_cast %1 : vector<1x4xf32> to vector<1x4x1xf32>
    %cst_2 = arith.constant 6.250000e-02 : f32
    %3 = vector.broadcast %cst_2 : f32 to vector<1x4x1xf32>
    %4 = arith.mulf %2, %3 : vector<1x4x1xf32>
    %5 = vector.broadcast %4 : vector<1x4x1xf32> to vector<1x4x16xf32>
    %6 = arith.subf %0, %5 : vector<1x4x16xf32>
    %7 = arith.mulf %6, %6 : vector<1x4x16xf32>
    %cst_3 = arith.constant dense<0.000000e+00> : vector<1x4xf32>
    %8 = vector.multi_reduction <add>, %7, %cst_3 [2] : vector<1x4x16xf32> to vector<1x4xf32>
    %cst_4 = arith.constant 0.0666666701 : f32
    %9 = vector.broadcast %cst_4 : f32 to vector<1x4xf32>
    %10 = arith.mulf %8, %9 : vector<1x4xf32>
    %c0_5 = arith.constant 0 : index
    %c0_6 = arith.constant 0 : index
    %11 = vector.load %arg2[%c0_5, %c0_6] : memref<4x2xf32, #tpu.memory_space<vmem>>, vector<4x2xf32>
    %cst_7 = arith.constant dense<0.000000e+00> : vector<1x2xf32>
    %12 = tpu.matmul %10, %11, %cst_7 {dimension_numbers = #tpu.dot_dimension_numbers<[1], [0], [0], [1], [0, 0, 1, 1], [], []>} : vector<1x4xf32>, vector<4x2xf32>, vector<1x2xf32> -> vector<1x2xf32>
    %cst_8 = arith.constant 0.000000e+00 : f32
    %13 = vector.broadcast %cst_8 : f32 to vector<1x2xf32>
    %14 = arith.maximumf %12, %13 : vector<1x2xf32>
    %c0_9 = arith.constant 0 : index
    %c0_10 = arith.constant 0 : index
    %15 = vector.load %arg3[%c0_9, %c0_10] : memref<2x4xf32, #tpu.memory_space<vmem>>, vector<2x4xf32>
    %cst_11 = arith.constant dense<0.000000e+00> : vector<1x4xf32>
    %16 = tpu.matmul %14, %15, %cst_11 {dimension_numbers = #tpu.dot_dimension_numbers<[1], [0], [0], [1], [0, 0, 1, 1], [], []>} : vector<1x2xf32>, vector<2x4xf32>, vector<1x4xf32> -> vector<1x4xf32>
    %17 = arith.negf %16 : vector<1x4xf32>
    %18 = math.exp %17 : vector<1x4xf32>
    %cst_12 = arith.constant 1.000000e+00 : f32
    %19 = vector.broadcast %cst_12 : f32 to vector<1x4xf32>
    %20 = arith.addf %19, %18 : vector<1x4xf32>
    %21 = arith.divf %19, %20 : vector<1x4xf32>
    %22 = vector.shape_cast %21 : vector<1x4xf32> to vector<1x4x1xf32>
    %23 = vector.broadcast %22 : vector<1x4x1xf32> to vector<1x4x16xf32>
    %24 = arith.mulf %0, %23 : vector<1x4x16xf32>
    %c0_13 = arith.constant 0 : index
    %c0_14 = arith.constant 0 : index
    %c0_15 = arith.constant 0 : index
    %25 = vector.load %arg4[%c0_13, %c0_14, %c0_15] : memref<1x4x16xf32, #tpu.memory_space<vmem>>, vector<1x4x16xf32>
    tpu.vector_store %arg4[%c0_13, %c0_14, %c0_15], %24 {strides = array<i32>} : memref<1x4x16xf32, #tpu.memory_space<vmem>>, vector<1x4x16xf32>,
    return
  }
  func.func @transform_0(%arg0: i32) -> (i32, i32, i32) {
    %c0_i32 = arith.constant 0 : i32
    %c0_i32_0 = arith.constant 0 : i32
    %c0_i32_1 = arith.constant 0 : i32
    return %arg0, %c0_i32, %c0_i32_0 : i32, i32, i32
  }
  func.func @transform_1(%arg0: i32) -> (i32, i32) {
    %c0_i32 = arith.constant 0 : i32
    %c0_i32_0 = arith.constant 0 : i32
    %c0_i32_1 = arith.constant 0 : i32
    return %c0_i32, %c0_i32_0 : i32, i32
  }
  func.func @transform_2(%arg0: i32) -> (i32, i32) {
    %c0_i32 = arith.constant 0 : i32
    %c0_i32_0 = arith.constant 0 : i32
    %c0_i32_1 = arith.constant 0 : i32
    return %c0_i32, %c0_i32_0 : i32, i32
  }
  func.func @transform_3(%arg0: i32) -> (i32, i32, i32) {
    %c0_i32 = arith.constant 0 : i32
    %c0_i32_0 = arith.constant 0 : i32
    %c0_i32_1 = arith.constant 0 : i32
    return %arg0, %c0_i32, %c0_i32_0 : i32, i32, i32
  }
}

</mosaic_0001>

<bundles_post_ra>
// kernel: tpu_custom_call.1
= control target key start
LH: loop header
LB: loop body
LE: loop exit
PB: predicated region body
PF: predicated region fallthrough
CT: control target
= control target key end

     0   :  { %8 = vsyncpa [#allocation3], 0  ;;  %s841_s0 = inlined_call_operand.hbm [shape: f32[2,4,16], index: 0, kind: input, shape index: {}]   ;;  %s842_s1 = inlined_call_operand.vmem [shape: f32[4,2], index: 1, kind: input, shape index: {}]   ;;  %s843_s2 = inlined_call_operand.vmem [shape: f32[2,4], index: 2, kind: input, shape index: {}]   ;;  %s844_s3 = inlined_call_operand.hbm [shape: f32[2,4,16], index: 3, kind: output, shape index: {}]  }
   0x1   :  { %10 = vsyncpa [#allocation3 + $0x1], 0 }
   0x2   :  { %11 = vsyncpa [#allocation4], 0 }
   0x3   :  { %13 = vsyncpa [#allocation4 + $0x1], 0  ;;  %s667_s12 = smov 0   ;;  %s669_s13 = smov 0  }
   0x4   :  { %s671_s14 = smov 0   ;;  %s673_s15 = smov 0  }
   0x5 LB: > { %s688_s16 = sadd.s32 4294967295, %s641_s15   ;;  %s462_s17 = sadd.s32 4294967294, %s641_s15   ;;  %s641_s15 = sphi %s673_s15, %s859_s15   ;;  %s637_s14 = sphi %s671_s14, %s858_s14   ;;  %s633_s13 = sphi %s669_s13, %s857_s13   ;;  %s629_s12 = sphi %s667_s12, %s856_s12  }
   0x6   : > { %s692_s18 = sadd.s32 1, %s641_s15   ;;  %s26_s19 = sadd.s32 1, %s637_s14 }
   0x7   : > { %s23_s20 = ssub.s32 %s641_s15, %s692_s18  ;;  %p33_p0 = scmp.ne.s32.totalorder %s637_s14, %s633_s13 }
   0x8   : > { %p24_p1 = scmp.eq.s32.totalorder %s23_s20, 0  ;;  %p34_p2 = scmp.eq.s32.totalorder %s641_s15, 0 }
   0x9   : > { %p39_p3 = scmp.ne.s32.totalorder %s633_s13, %s629_s12  ;;  %p40_p4 = scmp.eq.s32.totalorder %s688_s16, 0 }
   0xa   : > { %s704_s21 = scalar_select %p24_p1, %s637_s14, %s26_s19  }
   0xb   : > { %p706_p5 = por %p34_p2, %p33_p0  ;;  %p710_p6 = por %p40_p4, %p39_p3 }
   0xc   : > { %p105_p7 = scmp.eq.s32.totalorder %s688_s16, 1  ;;  %p111_p8 = scmp.eq.s32.totalorder %s462_s17, 1 }
   0xd   : > { %p505_p10 = scmp.lt.s32.totalorder %s641_s15, 2  ;;  %s137_s26 = sand.u32 1, %s637_s14  }
   0xe   : > { %p717_p11 = por %p105_p7, %p33_p0  ;;  %p721_p12 = por %p111_p8, %p39_p3 }
   0xf   : > { %s466_s27 = sshll.u32 %s641_s15, 6  ;;  %s465_s28 = sshll.u32 %s137_s26, 2 }
  0x10   : > { %s848_s24 = scalar_select %p717_p11, 1, 0 }
  0x11   : > { %s849_s25 = scalar_select %p721_p12, 1, 0 }
  0x12   : > { %s730_s4 = scalar_lea.hbm %s841_s0, %s466_s27  ;;  %s141_s5 = scalar_lea.vmem [#allocation2], %s465_s28 }
  0x13   : > { %s148_s6 = sshll.u32 %s141_s5, 4  ;;  %p734_p13 = pnand %p505_p10, %p706_p5  ;;  %s738_s6 = int_to_ptr.vmem [resolvable:$true] %s148_s6 }
  0x14   : > { %s138_s8 = scalar_lea.sflag [#allocation3], %s137_s26  ;;  %s545_s9 = scalar_lea.hbm %s730_s4, 64 }
  0x15   : > { %p546_p2 = scmp.ne.s32.totalorder %s730_s4, %s545_s9  ;;  %p547_p3 = pneg %p734_p13 }
  0x16   : > { %s550_s17 = scalar_lea.hbm %s841_s0, 128  ;;  %p551_p5 = scmp.lt.u32.totalorder %s730_s4, %s841_s0 }
  0x17   : > { %p548_p4 = pnand %p547_p3, %p546_p2  ;;  %p552_p8 = scmp.lt.u32.totalorder %s550_s17, %s545_s9 }
  0x18   : > { %p554_p9 = scmp.lt.u32.totalorder %s545_s9, %s730_s4 }
  0x19   : > { %p549_p7 = pneg %p548_p4  ;;  %p553_p10 = por %p552_p8, %p551_p5 }
  0x1b   : > { %p555_p0 = por %p554_p9, %p553_p10 }
  0x1d   : > { %p556_p1 = pnand %p555_p0, %p549_p7 }
  0x1f   : > { %559 = shalt.err (!%p556_p1)
}
  0x20   : > { %s560_s22 = scalar_lea.vmem %s738_s6, 64  ;;  %s643_s26 = smov [#allocation2]  }
  0x21   : > { %p561_p2 = scmp.ne.s32.totalorder %s738_s6, %s560_s22  ;;  %s565_s27 = sshll.u32 %s643_s26, 4  ;;  %s566_s27 = int_to_ptr.vmem [resolvable:$false] %s565_s27 }
  0x22   : > { %s567_s28 = scalar_lea.vmem %s566_s27, 128  ;;  %p568_p11 = scmp.lt.s32.totalorder %s738_s6, %s566_s27 }
  0x23   : > { %p563_p4 = pnand %p561_p2, %p547_p3  ;;  %p569_p5 = scmp.lt.s32.totalorder %s567_s28, %s560_s22 }
  0x25   : > { %p564_p12 = pneg %p563_p4  ;;  %p570_p8 = por %p569_p5, %p568_p11 }
  0x27   : > { %p571_p9 = pnand %p570_p8, %p564_p12 }
  0x29   : > { %574 = shalt.err (!%p571_p9)
}
  0x2a   : > { %500 = dma.hbm_to_vmem [thread:$0]  (!%p734_p13), %s730_s4, 64, %s738_s6, %s138_s8  }
  0x2b   : > { %p851_p0 = scmp.lt.s32.totalorder %s641_s15, 3  ;;  %p852_p1 = scmp.ge.s32.totalorder %s641_s15, 1 }
  0x2d   : > { %p154_p3 = pnand %p852_p1, %p851_p0 }
  0x2e   : > { %s772_s29 = sand.u32 (!%p154_p3), 1, %s633_s13  }
  0x2f   : > { %157 = sbr.rel (%p154_p3) target bundleno = 937 (0x3a9), region = 32  ;;  %s468_s30 = sshll.u32 (!%p154_p3), %s772_s29, 2 }
  0x30   : > { %s160_s5 = scalar_lea.sflag (!%p154_p3), [#allocation3], %s772_s29  ;;  %s163_s7 = scalar_lea.vmem (!%p154_p3), [#allocation2], %s468_s30 }
  0x36   : > { %620 = dma.done.wait (%p710_p6), %s160_s5, 64  }
  0x37   : > { %622 = vsyncadd (%p710_p6), %s160_s5, 4294967232  ;;  %vm187_vm0 = vcmask 125952   ;;  %v186_v0 = vld [vmem:[%s163_s7] sm:$0xf]  ;;  %v644_v7 = vmov 0.0   ;;  %vm209_vm1 = vcmask 1043456   ;;  %v200_v9 = vlaneseq }
  0x38   : > { %v188_v1 = vsel %vm187_vm0, %v186_v0, 0.0  ;;  %483 = vmatprep.subr.mxu0 %v644_v7  ;;  %v198_v8 = vld [vmem:[%s842_s1] sm:$0xf]  ;;  %488 = vmatprep.subr.mxu1 %v644_v7  ;;  %vm645_vm2 = vmmov 0   ;;  %vm206_vm3 = vcmask 31744   ;;  %vm289_vm4 = vcmask 1041408  }
  0x39   : > { %189 = vadd.xlane.f32.xlu0 %v188_v1  ;;  %484 = vmatpush3.msk.msra.mxu0 %vm209_vm1, %v198_v8  ;;  %v201_v10 = vand.u32 127, %v200_v9  ;;  %v203_v11 = vshrl.u32 %v200_v9, 7  ;;  %v284_v16 = vld [vmem:[%s843_s2] sm:$0x3]  ;;  %vm285_vm5 = vcmask 15360   ;;  %s476_s9 = sshll.u32 %s688_s16, 6 }
  0x3a   : > { %485 = vmatprep.mubr.msk.f32.mxu0 %vm645_vm2, %v644_v7  ;;  %490 = vmatprep.mubr.msk.f32.mxu1 %vm645_vm2, %v644_v7  ;;  %s185_s10 = scalar_lea.vmem [#allocation5], %s468_s30  ;;  %s796_s20 = scalar_lea.hbm %s844_s3, %s476_s9 }
  0x3b   : > { %v204_v12 = vsub.s32 %v201_v10, %v203_v11  ;;  %489 = vmatpush3.msk.msra.mxu1 %vm289_vm4, %v284_v16  ;;  %v371_v25 = vsub.s32 0, %v203_v11  ;;  %s392_s11 = sshll.u32 %s185_s10, 4  ;;  %s379_s22 = scalar_lea.sflag [#allocation4], %s772_s29  ;;  %s798_s11 = int_to_ptr.vmem [resolvable:$true] %s392_s11 }
  0x3c   : > { %s575_s26 = scalar_lea.vmem %s798_s11, 64  ;;  %p853_p11 = scmp.ne.s32.totalorder %s848_s24, 0 }
  0x3d   : > { %p576_p6 = scmp.ne.s32.totalorder %s798_s11, %s575_s26  ;;  %s646_s16 = smov [#allocation5]  }
  0x3e   : > { %s579_s27 = sshll.u32 %s646_s16, 4  ;;  %s580_s27 = int_to_ptr.vmem [resolvable:$false] %s579_s27 }
  0x3f   : > { %p577_p12 = pnand %p576_p6, %p853_p11  ;;  %s581_s28 = scalar_lea.vmem %s580_s27, 128 }
  0x40   : > { %p582_p7 = scmp.lt.s32.totalorder %s798_s11, %s580_s27  ;;  %p583_p10 = scmp.lt.s32.totalorder %s581_s28, %s575_s26 }
  0x41   : > { %p578_p13 = pneg %p577_p12 }
  0x42   : > { %p584_p2 = por %p583_p10, %p582_p7 }
  0x44   : > { %p585_p4 = pnand %p584_p2, %p578_p13 }
  0xc6   : > { %v190_v2 = vpop.xlane.xlu0 %189 }
  0xc7   : > { %v191_v3 = vmul.f32 0.0625, %v190_v2 }
  0xc9   : > { %v192_v4 = vsub.f32 %v186_v0, %v191_v3 }
  0xcb   : > { %v193_v5 = vmul.f32 %v192_v4, %v192_v4 }
  0xcd   : > { %v194_v6 = vsel %vm187_vm0, %v193_v5, 0.0 }
  0xce   : > { %195 = vadd.xlane.f32.xlu0 %v194_v6 }
 0x15b   : > { %v196_v13 = vpop.xlane.xlu0 %195 }
 0x15c   : > { %v197_v14 = vmul.f32 0.06666667, %v196_v13 }
 0x15e   : > { %v205_v15 = vrot.slane %v197_v14, %v204_v12 }
 0x160   : > { %486 = vmatmul.mubr.msk.f32.vlgmr.msra.gmra.mrb[0].mxu0 %vm206_vm3, %v205_v15 }
 0x233   : > { %v279_v17 = vpop.f32.mrb[0].mxu0 }
 0x234   : > { %v283_v18 = vmax.f32 %v279_v17, 0.0  ;;  %v487_v19 = vpop.f32.mrb[1].mxu0 }
 0x236   : > { %491 = vmatmul.mubr.msk.f32.vlgmr.msra.gmra.mrb[0].mxu1 %vm285_vm5, %v283_v18 }
 0x309   : > { %v359_v20 = vpop.f32.mrb[0].mxu1 }
 0x30a   : > { %v474_v21 = vmul.f32 -1.442695, %v359_v20  ;;  %v492_v22 = vpop.f32.mrb[1].mxu1 }
 0x30c   : > { %541 = vpow2.f32 %v474_v21 }
 0x316   : > { %v542_v23 = vpop.eup %541 }
 0x317   : > { %v366_v24 = vadd.f32 1.0, %v542_v23 }
 0x319   : > { %543 = vrcp.f32 %v366_v24 }
 0x323   : > { %v544_v26 = vpop.eup %543 }
 0x324   : > { %v372_v27 = vrot.slane %v544_v26, %v371_v25 }
 0x326   : > { %374 = vbcast.lane.b32.xlu1 %v372_v27, 256 }
 0x398   : > { %v375_v28 = vpop.permute.xlu1 %374 }
 0x399   : > { %v376_v29 = vmul.f32 %v375_v28, %v186_v0 }
 0x39b   : > { %377 = vst.msk [vmem:[%s185_s10] sm:$0xf] %vm187_vm0, %v376_v29 }
 0x39c   : > { %588 = shalt.err (!%p585_p4)
}
 0x39d   : > { %s589_s29 = scalar_lea.hbm %s796_s20, 64  ;;  %s593_s7 = scalar_lea.hbm %s844_s3, 128 }
 0x39e   : > { %p590_p5 = scmp.ne.s32.totalorder %s796_s20, %s589_s29  ;;  %p594_p0 = scmp.lt.u32.totalorder %s796_s20, %s844_s3 }
 0x39f   : > { %p595_p1 = scmp.lt.u32.totalorder %s593_s7, %s589_s29  ;;  %p597_p6 = scmp.lt.u32.totalorder %s589_s29, %s796_s20 }
 0x3a0   : > { %p591_p8 = pnand %p590_p5, %p853_p11 }
 0x3a1   : > { %p596_p3 = por %p595_p1, %p594_p0 }
 0x3a2   : > { %p592_p9 = pneg %p591_p8 }
 0x3a3   : > { %p598_p12 = por %p597_p6, %p596_p3 }
 0x3a5   : > { %p599_p13 = pnand %p598_p12, %p592_p9 }
 0x3a7   : > { %602 = shalt.err (!%p599_p13)
}
 0x3a8   : > { %495 = dma.vmem_to_hbm [thread:$0]  (%p853_p11), %s798_s11, 64, %s796_s20, %s379_s22  }
 0x3a9 PF: > { %s404_s23 = sand.u32 1, %s629_s12   ;;  %p854_p7 = scmp.ne.s32.totalorder %s849_s25, 0 }
 0x3aa   : > { %p855_p10 = scmp.ge.s32.totalorder %s641_s15, 2  ;;  %s405_s8 = scalar_lea.sflag [#allocation4], %s404_s23 }
 0x3ac   : > { %p502_p2 = pnand %p855_p10, %p854_p7 }
 0x3ae   : > { %624 = dma.done.wait (!%p502_p2), %s405_s8, 64  }
 0x3af   : > { %626 = vsyncadd (!%p502_p2), %s405_s8, 4294967232  ;;  %p16_p4 = scmp.ge.s32.totalorder %s692_s18, 4   ;;  %s856_s12 = smov %s633_s13 }
 0x3b0   : > { %s857_s13 = smov %s637_s14  ;;  %s858_s14 = smov %s704_s21 }
 0x3b1   : > { %s859_s15 = smov %s692_s18  ;;  %18 = sbr.rel (!%p16_p4) target bundleno = 5 (0x5), region = 77 }
 0x3b8   :  { %410 = vsyncpa [#allocation3], 1 }
 0x3b9   :  { %412 = vsyncpa [#allocation3 + $0x1], 1 }
 0x3ba   :  { %413 = vsyncpa [#allocation4], 1 }
 0x3bb   :  { %415 = vsyncpa [#allocation4 + $0x1], 1 }

</bundles_post_ra>
